<compile_context>
chip_gen: v6e
topology: v6e:2x2x1
jax: 0.10.0
libtpu: 0.0.40
codegen_flags: <defaults>
</compile_context>

<pallas_src>
import jax
import jax.numpy as jnp
from jax.experimental import pallas as pl
from jax.experimental.pallas import tpu as pltpu


# ---------------------------------------------------------------------------
# Kernels
# ---------------------------------------------------------------------------

def expert_kernel_resident(x_ref, w1_ref, b1_ref, w2_ref, b2_ref, o_ref):
    """Weights fully resident in VMEM; 1-D grid over token tiles."""
    h = jnp.dot(x_ref[...], w1_ref[...], preferred_element_type=jnp.float32)
    h = jnp.maximum(h + b1_ref[...], 0.0)
    out = jnp.dot(h.astype(w2_ref.dtype), w2_ref[...],
                  preferred_element_type=jnp.float32)
    o_ref[...] = (out + b2_ref[...]).astype(o_ref.dtype)


def expert_kernel_tiled(x_ref, w1_ref, b1_ref, w2_ref, b2_ref, o_ref, acc_ref):
    """Hidden dim streamed in slices; f32 accumulator across the k axis."""
    k = pl.program_id(1)

    @pl.when(k == 0)
    def _init():
        acc_ref[...] = jnp.zeros_like(acc_ref)

    # fc1 slice: [tm, D] @ [D, th] -> f32, + bias, ReLU (elementwise in H, so
    # H-tiling is exact).
    h = jnp.dot(x_ref[...], w1_ref[...], preferred_element_type=jnp.float32)
    h = jnp.maximum(h + b1_ref[...], 0.0)

    # fc2 slice: [tm, th] @ [th, D], accumulated in f32 VMEM scratch.
    acc_ref[...] += jnp.dot(h.astype(w2_ref.dtype), w2_ref[...],
                            preferred_element_type=jnp.float32)

    @pl.when(k == pl.num_programs(1) - 1)
    def _finalize():
        o_ref[...] = (acc_ref[...] + b2_ref[...]).astype(o_ref.dtype)


# ---------------------------------------------------------------------------
# Wrapper
# ---------------------------------------------------------------------------

def _vmem_capacity_bytes():
    """Physical per-core VMEM; conservative 64 MiB (v7x) fallback."""
    try:
        cap = getattr(pltpu.get_tpu_info(), "vmem_capacity_bytes", None)
        if cap:
            return int(cap)
    except Exception:
        pass
    return 64 << 20


def prepare_expert_params(w1, b1, w2, b2, compute_dtype=jnp.bfloat16):
    """One-time cast of the weights to the MXU compute dtype (biases stay f32).

    Call this at parameter-load time so expert_forward does not re-cast (and
    therefore re-stream from HBM) the full weight matrices on every call.
    """
    return (w1.astype(compute_dtype), b1.astype(jnp.float32),
            w2.astype(compute_dtype), b2.astype(jnp.float32))


def expert_forward(x, w1, b1, w2, b2, *, tile_m=256, tile_h=512,
                   compute_dtype=jnp.bfloat16, force_tiled=False):
    """relu(x @ w1 + b1) @ w2 + b2.

    x: [N, D]; w1: [D, H]; b1: [H]; w2: [H, D]; b2: [D] -> [N, D] in x.dtype.
    """
    N, D = x.shape
    H = w1.shape[1]
    assert D % 128 == 0, "input_dim should be a multiple of 128 (lane-dense out)"
    assert H % 128 == 0, "hidden_dim should be a multiple of 128 (lane-dense)"

    out_dtype = x.dtype
    cb = jnp.dtype(compute_dtype).itemsize
    ob = jnp.dtype(out_dtype).itemsize

    # Only cast if the caller hasn't already prepared compute-dtype weights.
    xc = x if x.dtype == compute_dtype else x.astype(compute_dtype)
    w1c = w1 if w1.dtype == compute_dtype else w1.astype(compute_dtype)
    w2c = w2 if w2.dtype == compute_dtype else w2.astype(compute_dtype)
    b1_2d = b1.reshape(1, H).astype(jnp.float32)
    b2_2d = b2.reshape(1, D).astype(jnp.float32)

    # --- VMEM budgeting (generation-aware) --------------------------------
    vmem_cap = _vmem_capacity_bytes()
    vmem_budget = vmem_cap - (8 << 20)          # headroom for compiler scratch

    def resident_need(tm):
        return (2 * tm * D * (cb + ob)          # x + out tiles (double-buffered)
                + 2 * 2 * D * H * cb            # W1 + W2 (double-buffered, const idx)
                + 2 * (H + D) * 4               # bias rows
                + tm * H * 4)                   # f32 fc1 intermediate

    def tiled_need(tm, th):
        return (2 * tm * D * (cb + ob)          # x + out tiles
                + 2 * 2 * D * th * cb           # W1 + W2 slices (double-buffered)
                + 2 * (th + D) * 4              # bias rows
                + tm * D * 4                    # f32 accumulator scratch
                + tm * th * 4)                  # f32 fc1 intermediate

    tm_candidates = sorted({t for t in (tile_m, 256, 128) if t <= tile_m},
                           reverse=True)
    th_candidates = sorted({t for t in (tile_h, 512, 256, 128)
                            if t <= tile_h and t <= H and H % t == 0},
                           reverse=True)
    assert th_candidates, "hidden_dim must be divisible by a tile_h candidate"

    mode, sel_tm, sel_th = None, None, None
    if not force_tiled:
        for tm in tm_candidates:                # weights-resident fast path
            if resident_need(tm) <= vmem_budget:
                mode, sel_tm = "resident", tm
                break
    if mode is None:                            # streamed fallback
        for tm in tm_candidates:
            for th in th_candidates:
                if tiled_need(tm, th) <= vmem_budget:
                    mode, sel_tm, sel_th = "tiled", tm, th
                    break
            if mode is not None:
                break
    assert mode is not None, "no tile configuration fits the VMEM budget"

    # Ragged per-expert token counts: pad to a tile_m multiple, slice after.
    pad = (-N) % sel_tm
    x_p = jnp.pad(xc, ((0, pad), (0, 0))) if pad else xc
    n_pad = N + pad
    n_token_tiles = n_pad // sel_tm

    need = resident_need(sel_tm) if mode == "resident" else tiled_need(sel_tm, sel_th)
    vmem_limit = int(min(max(int(1.5 * need), 32 << 20), vmem_budget))

    # Realistic traffic: weights read once (resident) or once per token tile.
    weight_bytes = 2 * D * H * cb if mode == "resident" else n_token_tiles * 2 * D * H * cb
    cost = pl.CostEstimate(
        flops=4 * n_pad * D * H,                # two matmuls
        transcendentals=0,
        bytes_accessed=int(n_pad * D * cb + weight_bytes + (H + D) * 4
                           + n_pad * D * ob),
    )

    if mode == "resident":
        out = pl.pallas_call(
            expert_kernel_resident,
            out_shape=jax.ShapeDtypeStruct((n_pad, D), out_dtype),
            grid_spec=pltpu.PrefetchScalarGridSpec(
                num_scalar_prefetch=0,
                grid=(n_token_tiles,),
                in_specs=[
                    pl.BlockSpec((sel_tm, D), lambda i: (i, 0)),   # x tile
                    pl.BlockSpec((D, H), lambda i: (0, 0)),        # W1 resident
                    pl.BlockSpec((1, H), lambda i: (0, 0)),        # b1 resident
                    pl.BlockSpec((H, D), lambda i: (0, 0)),        # W2 resident
                    pl.BlockSpec((1, D), lambda i: (0, 0)),        # b2 resident
                ],
                out_specs=pl.BlockSpec((sel_tm, D), lambda i: (i, 0)),
            ),
            compiler_params=pltpu.CompilerParams(
                dimension_semantics=("parallel",),
                vmem_limit_bytes=vmem_limit,
            ),
            cost_estimate=cost,
        )(x_p, w1c, b1_2d, w2c, b2_2d)
    else:
        out = pl.pallas_call(
            expert_kernel_tiled,
            out_shape=jax.ShapeDtypeStruct((n_pad, D), out_dtype),
            grid_spec=pltpu.PrefetchScalarGridSpec(
                num_scalar_prefetch=0,
                grid=(n_token_tiles, H // sel_th),
                in_specs=[
                    pl.BlockSpec((sel_tm, D), lambda i, k: (i, 0)),    # x tile
                    pl.BlockSpec((D, sel_th), lambda i, k: (0, k)),    # W1 slice
                    pl.BlockSpec((1, sel_th), lambda i, k: (0, k)),    # b1 slice
                    pl.BlockSpec((sel_th, D), lambda i, k: (k, 0)),    # W2 slice
                    pl.BlockSpec((1, D), lambda i, k: (0, 0)),         # b2
                ],
                out_specs=pl.BlockSpec((sel_tm, D), lambda i, k: (i, 0)),
                scratch_shapes=[pltpu.VMEM((sel_tm, D), jnp.float32)],
            ),
            compiler_params=pltpu.CompilerParams(
                dimension_semantics=("parallel", "arbitrary"),
                vmem_limit_bytes=vmem_limit,
            ),
            cost_estimate=cost,
        )(x_p, w1c, b1_2d, w2c, b2_2d)

    return out[:N] if pad else out


def init_expert_params(key, input_dim, hidden_dim, dtype=jnp.float32):
    """Deterministic init mirroring nn.Linear's U(-1/sqrt(fan_in), 1/sqrt(fan_in))."""
    k1, k2, k3, k4 = jax.random.split(key, 4)
    lim1 = 1.0 / (input_dim ** 0.5)
    lim2 = 1.0 / (hidden_dim ** 0.5)
    # Stored already transposed: [in, out]
    w1 = jax.random.uniform(k1, (input_dim, hidden_dim), dtype, -lim1, lim1)
    b1 = jax.random.uniform(k2, (hidden_dim,), dtype, -lim1, lim1)
    w2 = jax.random.uniform(k3, (hidden_dim, input_dim), dtype, -lim2, lim2)
    b2 = jax.random.uniform(k4, (input_dim,), dtype, -lim2, lim2)
    return w1, b1, w2, b2


if __name__ == "__main__":
    key = jax.random.PRNGKey(0)
    kx, kp = jax.random.split(key)

    # Small but lane-dense shapes; N is deliberately NOT a multiple of tile_m
    # to exercise the ragged-token padding path.
    N, input_dim, hidden_dim = 200, 128, 256
    x = jax.random.normal(kx, (N, input_dim), jnp.float32)
    w1, b1, w2, b2 = init_expert_params(kp, input_dim, hidden_dim)

    # One-time weight cast (out of the per-call hot path).
    pw1, pb1, pw2, pb2 = prepare_expert_params(w1, b1, w2, b2)

    # Fast path: weights resident in VMEM, 1-D token grid.
    out_resident = jax.block_until_ready(expert_forward(x, pw1, pb1, pw2, pb2))
    # Streamed fallback path (forced, tile_h=128 -> 2 hidden slices).
    out_tiled = jax.block_until_ready(
        expert_forward(x, pw1, pb1, pw2, pb2, force_tiled=True, tile_h=128))

    # Reference in plain JAX (same math as the PyTorch module), f32 throughout.
    ref = jnp.maximum(x @ w1 + b1, 0.0) @ w2 + b2
    assert out_resident.shape == (N, input_dim)
    assert out_tiled.shape == (N, input_dim)
    # bf16 compute with f32 accumulation vs f32 reference -> loose tolerance.
    assert jnp.allclose(out_resident, ref, atol=3e-2, rtol=3e-2), "resident mismatch"
    assert jnp.allclose(out_tiled, ref, atol=3e-2, rtol=3e-2), "tiled mismatch"

    print("KERNEL_OK")
</pallas_src>

<mosaic_0001>
module attributes {stable_mosaic.version = 11 : i64} {
  func.func @expert_kernel_resident(%arg0: i32, %arg1: memref<256x128xbf16, #tpu.memory_space<vmem>>, %arg2: memref<128x256xbf16, #tpu.memory_space<vmem>>, %arg3: memref<1x256xf32, #tpu.memory_space<vmem>>, %arg4: memref<256x128xbf16, #tpu.memory_space<vmem>>, %arg5: memref<1x128xf32, #tpu.memory_space<vmem>>, %arg6: memref<256x128xf32, #tpu.memory_space<vmem>>) attributes {dimension_semantics = [#tpu.dimension_semantics<parallel>], iteration_bounds = array<i64: 1>, scalar_prefetch = 0 : i64, scratch_operands = 0 : i64, tpu.core_type = #tpu.core_type<tc>, window_params = [{transform_indices = @transform_0, window_bounds = array<i64: 256, 128>}, {pipeline_mode = #tpu.pipeline_mode<synchronous>, transform_indices = @transform_1, window_bounds = array<i64: 128, 256>}, {pipeline_mode = #tpu.pipeline_mode<synchronous>, transform_indices = @transform_2, window_bounds = array<i64: 1, 256>}, {pipeline_mode = #tpu.pipeline_mode<synchronous>, transform_indices = @transform_3, window_bounds = array<i64: 256, 128>}, {pipeline_mode = #tpu.pipeline_mode<synchronous>, transform_indices = @transform_4, window_bounds = array<i64: 1, 128>}, {transform_indices = @transform_5, window_bounds = array<i64: 256, 128>}]} {
    %c0 = arith.constant 0 : index
    %c0_0 = arith.constant 0 : index
    %0 = vector.load %arg1[%c0, %c0_0] : memref<256x128xbf16, #tpu.memory_space<vmem>>, vector<256x128xbf16>
    %c0_1 = arith.constant 0 : index
    %c0_2 = arith.constant 0 : index
    %1 = vector.load %arg2[%c0_1, %c0_2] : memref<128x256xbf16, #tpu.memory_space<vmem>>, vector<128x256xbf16>
    %cst = arith.constant dense<0.000000e+00> : vector<256x256xf32>
    %2 = tpu.matmul %0, %1, %cst {dimension_numbers = #tpu.dot_dimension_numbers<[1], [0], [0], [1], [0, 0, 1, 1], [], []>} : vector<256x128xbf16>, vector<128x256xbf16>, vector<256x256xf32> -> vector<256x256xf32>
    %c0_3 = arith.constant 0 : index
    %c0_4 = arith.constant 0 : index
    %3 = vector.load %arg3[%c0_3, %c0_4] : memref<1x256xf32, #tpu.memory_space<vmem>>, vector<1x256xf32>
    %4 = vector.broadcast %3 : vector<1x256xf32> to vector<256x256xf32>
    %5 = arith.addf %2, %4 : vector<256x256xf32>
    %cst_5 = arith.constant 0.000000e+00 : f32
    %6 = vector.broadcast %cst_5 : f32 to vector<256x256xf32>
    %7 = arith.maximumf %5, %6 : vector<256x256xf32>
    %8 = arith.truncf %7 : vector<256x256xf32> to vector<256x256xbf16>
    %c0_6 = arith.constant 0 : index
    %c0_7 = arith.constant 0 : index
    %9 = vector.load %arg4[%c0_6, %c0_7] : memref<256x128xbf16, #tpu.memory_space<vmem>>, vector<256x128xbf16>
    %cst_8 = arith.constant dense<0.000000e+00> : vector<256x128xf32>
    %10 = tpu.matmul %8, %9, %cst_8 {dimension_numbers = #tpu.dot_dimension_numbers<[1], [0], [0], [1], [0, 0, 1, 1], [], []>} : vector<256x256xbf16>, vector<256x128xbf16>, vector<256x128xf32> -> vector<256x128xf32>
    %c0_9 = arith.constant 0 : index
    %c0_10 = arith.constant 0 : index
    %11 = vector.load %arg5[%c0_9, %c0_10] : memref<1x128xf32, #tpu.memory_space<vmem>>, vector<1x128xf32>
    %12 = vector.broadcast %11 : vector<1x128xf32> to vector<256x128xf32>
    %13 = arith.addf %10, %12 : vector<256x128xf32>
    %c0_11 = arith.constant 0 : index
    %c0_12 = arith.constant 0 : index
    %14 = vector.load %arg6[%c0_11, %c0_12] : memref<256x128xf32, #tpu.memory_space<vmem>>, vector<256x128xf32>
    tpu.vector_store %arg6[%c0_11, %c0_12], %13 {strides = array<i32>} : memref<256x128xf32, #tpu.memory_space<vmem>>, vector<256x128xf32>,
    return
  }
  func.func @transform_0(%arg0: i32) -> (i32, i32) {
    %c0_i32 = arith.constant 0 : i32
    %c0_i32_0 = arith.constant 0 : i32
    return %arg0, %c0_i32 : i32, i32
  }
  func.func @transform_1(%arg0: i32) -> (i32, i32) {
    %c0_i32 = arith.constant 0 : i32
    %c0_i32_0 = arith.constant 0 : i32
    %c0_i32_1 = arith.constant 0 : i32
    return %c0_i32, %c0_i32_0 : i32, i32
  }
  func.func @transform_2(%arg0: i32) -> (i32, i32) {
    %c0_i32 = arith.constant 0 : i32
    %c0_i32_0 = arith.constant 0 : i32
    %c0_i32_1 = arith.constant 0 : i32
    return %c0_i32, %c0_i32_0 : i32, i32
  }
  func.func @transform_3(%arg0: i32) -> (i32, i32) {
    %c0_i32 = arith.constant 0 : i32
    %c0_i32_0 = arith.constant 0 : i32
    %c0_i32_1 = arith.constant 0 : i32
    return %c0_i32, %c0_i32_0 : i32, i32
  }
  func.func @transform_4(%arg0: i32) -> (i32, i32) {
    %c0_i32 = arith.constant 0 : i32
    %c0_i32_0 = arith.constant 0 : i32
    %c0_i32_1 = arith.constant 0 : i32
    return %c0_i32, %c0_i32_0 : i32, i32
  }
  func.func @transform_5(%arg0: i32) -> (i32, i32) {
    %c0_i32 = arith.constant 0 : i32
    %c0_i32_0 = arith.constant 0 : i32
    return %arg0, %c0_i32 : i32, i32
  }
}

</mosaic_0001>

<bundles_post_ra>
// kernel: tpu_custom_call.1
= control target key start
LH: loop header
LB: loop body
LE: loop exit
PB: predicated region body
PF: predicated region fallthrough
CT: control target
= control target key end

     0   :  { %10 = vsyncpa [#allocation3], 0  ;;  %s1427_s0 = inlined_call_operand.hbm [shape: bf16[256,128], index: 0, kind: input, shape index: {}]   ;;  %s1428_s1 = inlined_call_operand.hbm [shape: bf16[128,256], index: 1, kind: input, shape index: {}]   ;;  %s1429_s2 = inlined_call_operand.vmem [shape: f32[1,256], index: 2, kind: input, shape index: {}]   ;;  %s1430_s3 = inlined_call_operand.hbm [shape: bf16[256,128], index: 3, kind: input, shape index: {}]   ;;  %s1431_s4 = inlined_call_operand.vmem [shape: f32[1,128], index: 4, kind: input, shape index: {}]   ;;  %s1432_s5 = inlined_call_operand.hbm [shape: f32[256,128], index: 5, kind: output, shape index: {}]  }
   0x1   :  { %11 = vsyncpa [#allocation6], 0 }
   0x2   :  { %12 = vsyncpa [#allocation4], 0  ;;  %s1246_s18 = smov [#allocation5]  }
   0x3   :  { %s30_s19 = sshll.u32 %s1246_s18, 4  ;;  %s31_s19 = int_to_ptr.vmem [resolvable:$true] %s30_s19 }
   0x4   :  { %s1168_s20 = scalar_lea.vmem %s31_s19, 2048  ;;  %p1173_p1 = scmp.lt.s32.totalorder %s31_s19, %s31_s19 }
   0x5   :  { %p1169_p0 = scmp.ne.s32.totalorder %s31_s19, %s1168_s20  ;;  %p1174_p2 = scmp.lt.s32.totalorder %s1168_s20, %s1168_s20 }
   0x7   :  { %p1175_p3 = por %p1174_p2, %p1173_p1 }
   0x9   :  { %p1176_p4 = pnand %p1175_p3, %p1169_p0 }
   0xb   :  { %1179 = shalt.err (!%p1176_p4)
}
   0xc   :  { %s1247_s21 = smov 128   ;;  %s1248_s22 = smov 8  }
   0xd   :  { %36 = dma.hbm_to_vmem [thread:$0]  %s1428_s1, 2048, %s31_s19, [#allocation6], %s1247_s21, %s1247_s21, %s1248_s22  }
   0xe   :  { %s1249_s25 = smov [#allocation2]  }
   0xf   :  { %s18_s26 = sshll.u32 %s1249_s25, 4  ;;  %s19_s26 = int_to_ptr.vmem [resolvable:$true] %s18_s26 }
  0x10   :  { %s1188_s27 = scalar_lea.vmem %s19_s26, 2048  ;;  %p1193_p6 = scmp.lt.s32.totalorder %s19_s26, %s19_s26 }
  0x11   :  { %p1189_p5 = scmp.ne.s32.totalorder %s19_s26, %s1188_s27  ;;  %p1194_p7 = scmp.lt.s32.totalorder %s1188_s27, %s1188_s27 }
  0x13   :  { %p1195_p8 = por %p1194_p7, %p1193_p6 }
  0x15   :  { %p1196_p9 = pnand %p1195_p8, %p1189_p5 }
  0x17   :  { %1199 = shalt.err (!%p1196_p9)
}
  0x18   :  { %s1250_s28 = smov 64   ;;  %s1251_s29 = smov 4  }
  0x19   :  { %24 = dma.hbm_to_vmem [thread:$0]  %s1427_s0, 2048, %s19_s26, [#allocation3], %s1250_s28, %s1250_s28, %s1251_s29  }
  0x1a   :  { %s1252_s7 = smov [#allocation7]  }
  0x1b   :  { %s44_s8 = sshll.u32 %s1252_s7, 4  ;;  %s45_s8 = int_to_ptr.vmem [resolvable:$true] %s44_s8 }
  0x1c   :  { %s1208_s1 = scalar_lea.vmem %s45_s8, 2048  ;;  %p1213_p11 = scmp.lt.s32.totalorder %s45_s8, %s45_s8 }
  0x1d   :  { %p1209_p10 = scmp.ne.s32.totalorder %s45_s8, %s1208_s1  ;;  %p1214_p12 = scmp.lt.s32.totalorder %s1208_s1, %s1208_s1 }
  0x1f   :  { %p1215_p13 = por %p1214_p12, %p1213_p11 }
  0x21   :  { %p1216_p0 = pnand %p1215_p13, %p1209_p10 }
  0x23   :  { %1219 = shalt.err (!%p1216_p0)
}
  0x24   :  { %50 = dma.hbm_to_vmem [thread:$0]  %s1430_s3, 2048, %s45_s8, [#allocation6], %s1250_s28, %s1250_s28, %s1251_s29  }
  0x25   :  { %1240 = dma.done.wait [#allocation3], 2048  }
  0x26   :  { %1241 = vsyncadd [#allocation3], 4294965248 }
  0x27   :  { %1242 = dma.done.wait [#allocation6], 4096  }
  0x28   :  { %1243 = vsyncadd [#allocation6], 4294963200  ;;  %v1253_v0 = vmov 0   ;;  %v1104_v1 = vld [vmem:[#allocation5 + $0x74] ss:$8 sps:$4 sm:$0xff]   ;;  %v1128_v18 = vld [vmem:[#allocation2] sm:$0xff]   ;;  %v113_v49 = vlaneseq }
  0x29   :  { %331 = vmatprep.mubr.bf16.mxu0 %v1253_v0  ;;  %v1106_v2 = vld [vmem:[#allocation5 + $0x70] ss:$8 sps:$4 sm:$0xff]   ;;  %299 = vmatprep.subr.bf16.mxu0 %v1104_v1  ;;  %v1107_v3 = vld [vmem:[#allocation5 + $0x64] ss:$8 sps:$4 sm:$0xff]   ;;  %v1109_v4 = vld [vmem:[#allocation5 + $0x60] ss:$8 sps:$4 sm:$0xff]  }
  0x2a   :  { %300 = vmatpush1.bf16.msra.mxu0 %v1106_v2  ;;  %v1110_v5 = vld [vmem:[#allocation5 + $0x54] ss:$8 sps:$4 sm:$0xff]   ;;  %v1112_v6 = vld [vmem:[#allocation5 + $0x50] ss:$8 sps:$4 sm:$0xff]   ;;  %v1113_v7 = vld [vmem:[#allocation5 + $0x44] ss:$8 sps:$4 sm:$0xff]  }
  0x2b   :  { %301 = vmatprep.subr.bf16.mxu0 %v1107_v3  ;;  %v1115_v8 = vld [vmem:[#allocation5 + $0x40] ss:$8 sps:$4 sm:$0xff]   ;;  %v1116_v9 = vld [vmem:[#allocation5 + $0x34] ss:$8 sps:$4 sm:$0xff]   ;;  %v1118_v10 = vld [vmem:[#allocation5 + $0x30] ss:$8 sps:$4 sm:$0xff]  }
  0x2c   :  { %v1119_v11 = vld [vmem:[#allocation5 + $0x24] ss:$8 sps:$4 sm:$0xff]   ;;  %v1121_v12 = vld [vmem:[#allocation5 + $0x20] ss:$8 sps:$4 sm:$0xff]   ;;  %v1122_v13 = vld [vmem:[#allocation5 + $0x14] ss:$8 sps:$4 sm:$0xff]  }
  0x2d   :  { %v1124_v14 = vld [vmem:[#allocation5 + $0x10] ss:$8 sps:$4 sm:$0xff]   ;;  %v1125_v15 = vld [vmem:[#allocation5 + $0x4] ss:$8 sps:$4 sm:$0xff]   ;;  %v1127_v16 = vld [vmem:[#allocation5] ss:$8 sps:$4 sm:$0xff]  }
  0x2e   :  { %302 = vmatpush1.bf16.msra.mxu0 %v1109_v4  ;;  %v1144_v17 = vld [vmem:[#allocation7 + $0x78] sm:$0xff]   ;;  %v1146_v20 = vld [vmem:[#allocation7 + $0x70] sm:$0xff]   ;;  %v1148_v22 = vld [vmem:[#allocation7 + $0x68] sm:$0xff]   ;;  %v114_v50 = vshrl.u32 %v113_v49, 7 }
  0x2f   :  { %303 = vmatprep.subr.bf16.mxu0 %v1110_v5  ;;  %v1145_v19 = vld [vmem:[#allocation7 + $0x38] sm:$0xff]   ;;  %983 = vmatprep.subr.bf16.mxu1 %v1144_v17  ;;  %v1147_v21 = vld [vmem:[#allocation7 + $0x30] sm:$0xff]   ;;  %v1149_v23 = vld [vmem:[#allocation7 + $0x28] sm:$0xff]  }
  0x30   :  { %984 = vmatpush3.bf16.msra.mxu1 %v1145_v19  ;;  %v1150_v24 = vld [vmem:[#allocation7 + $0x60] sm:$0xff]   ;;  %v1129_v25 = vld [vmem:[#allocation2 + $0x8] sm:$0xff]   ;;  %v1152_v27 = vld [vmem:[#allocation7 + $0x58] sm:$0xff]   ;;  %v119_v51 = vsub.s32 1, %v114_v50  ;;  %v115_v52 = vsub.s32 0, %v114_v50 }
  0x31   :  { %985 = vmatprep.subr.bf16.mxu1 %v1146_v20  ;;  %v1151_v26 = vld [vmem:[#allocation7 + $0x20] sm:$0xff]   ;;  %v1153_v28 = vld [vmem:[#allocation7 + $0x18] sm:$0xff]   ;;  %v1130_v29 = vld [vmem:[#allocation2 + $0x10] sm:$0xff]  }
  0x32   :  { %304 = vmatpush1.bf16.msra.mxu0 %v1112_v6  ;;  %v1131_v30 = vld [vmem:[#allocation2 + $0x18] sm:$0xff]   ;;  %v1132_v31 = vld [vmem:[#allocation2 + $0x20] sm:$0xff]   ;;  %v1133_v32 = vld [vmem:[#allocation2 + $0x28] sm:$0xff]  }
  0x33   :  { %305 = vmatprep.subr.bf16.mxu0 %v1113_v7  ;;  %v1134_v33 = vld [vmem:[#allocation2 + $0x30] sm:$0xff]   ;;  %v1135_v34 = vld [vmem:[#allocation2 + $0x38] sm:$0xff]   ;;  %v1136_v35 = vld [vmem:[#allocation2 + $0x40] sm:$0xff]  }
  0x34   :  { %986 = vmatpush3.bf16.msra.mxu1 %v1147_v21  ;;  %v1154_v36 = vld [vmem:[#allocation7 + $0x50] sm:$0xff]   ;;  %v1137_v38 = vld [vmem:[#allocation2 + $0x48] sm:$0xff]   ;;  %v1158_v41 = vld [vmem:[#allocation7 + $0x40] sm:$0xff]  }
  0x35   :  { %987 = vmatprep.subr.bf16.mxu1 %v1148_v22  ;;  %v1155_v37 = vld [vmem:[#allocation7 + $0x10] sm:$0xff]   ;;  %v1156_v39 = vld [vmem:[#allocation7 + $0x48] sm:$0xff]   ;;  %v1159_v42 = vld [vmem:[#allocation7] sm:$0xff]  }
  0x36   :  { %306 = vmatpush1.bf16.msra.mxu0 %v1115_v8  ;;  %v1157_v40 = vld [vmem:[#allocation7 + $0x8] sm:$0xff]   ;;  %v1138_v43 = vld [vmem:[#allocation2 + $0x50] sm:$0xff]   ;;  %v1139_v44 = vld [vmem:[#allocation2 + $0x58] sm:$0xff]  }
  0x37   :  { %307 = vmatprep.subr.bf16.mxu0 %v1116_v9  ;;  %v1140_v45 = vld [vmem:[#allocation2 + $0x60] sm:$0xff]   ;;  %v1141_v46 = vld [vmem:[#allocation2 + $0x68] sm:$0xff]   ;;  %v1142_v47 = vld [vmem:[#allocation2 + $0x70] sm:$0xff]  }
  0x38   :  { %988 = vmatpush3.bf16.msra.mxu1 %v1149_v23  ;;  %v1143_v48 = vld [vmem:[#allocation2 + $0x78] sm:$0xff]   ;;  %v111_v53 = vld [vmem:[%s1429_s2] sm:$0x3] }
  0x39   :  { %989 = vmatprep.subr.bf16.mxu1 %v1150_v24  ;;  %v1316_v55 = vrot.slane %v111_v53, %v119_v51  ;;  %v1318_v56 = vrot.slane %v111_v53, %v115_v52 }
  0x3a   :  { %308 = vmatpush1.bf16.msra.mxu0 %v1118_v10 }
  0x3b   :  { %309 = vmatprep.subr.bf16.mxu0 %v1119_v11 }
  0x3c   :  { %990 = vmatpush3.bf16.msra.mxu1 %v1151_v26 }
  0x3d   :  { %991 = vmatprep.subr.bf16.mxu1 %v1152_v27 }
  0x3e   :  { %310 = vmatpush1.bf16.msra.mxu0 %v1121_v12 }
  0x3f   :  { %311 = vmatprep.subr.bf16.mxu0 %v1122_v13 }
  0x40   :  { %992 = vmatpush3.bf16.msra.mxu1 %v1153_v28 }
  0x41   :  { %993 = vmatprep.subr.bf16.mxu1 %v1154_v36 }
  0x42   :  { %312 = vmatpush1.bf16.msra.mxu0 %v1124_v14 }
  0x43   :  { %313 = vmatprep.subr.bf16.mxu0 %v1125_v15 }
  0x44   :  { %994 = vmatpush3.bf16.msra.mxu1 %v1155_v37 }
  0x45   :  { %995 = vmatprep.subr.bf16.mxu1 %v1156_v39 }
  0x46   :  { %314 = vmatpush1.bf16.msra.mxu0 %v1127_v16 }
  0x48   :  { %996 = vmatpush3.bf16.msra.mxu1 %v1157_v40 }
  0x49   :  { %332 = vmatmul.mubr.bf16.vlgmr.msra.gmra.mxu0 %v1128_v18  ;;  %997 = vmatprep.subr.bf16.mxu1 %v1158_v41 }
  0x4a   :  { %341 = vmatprep.mubr.bf16.mxu0 %v1253_v0 }
  0x4c   :  { %998 = vmatpush3.bf16.msra.mxu1 %v1159_v42 }
  0x51   :  { %342 = vmatmul.mubr.bf16.gmra.mxu0 %v1129_v25 }
  0x52   :  { %351 = vmatprep.mubr.bf16.mxu0 %v1253_v0 }
  0x59   :  { %352 = vmatmul.mubr.bf16.gmra.mxu0 %v1130_v29 }
  0x5a   :  { %361 = vmatprep.mubr.bf16.mxu0 %v1253_v0 }
  0x61   :  { %362 = vmatmul.mubr.bf16.gmra.mxu0 %v1131_v30 }
  0x62   :  { %371 = vmatprep.mubr.bf16.mxu0 %v1253_v0 }
  0x69   :  { %372 = vmatmul.mubr.bf16.gmra.mxu0 %v1132_v31 }
  0x6a   :  { %381 = vmatprep.mubr.bf16.mxu0 %v1253_v0 }
  0x71   :  { %382 = vmatmul.mubr.bf16.gmra.mxu0 %v1133_v32 }
  0x72   :  { %391 = vmatprep.mubr.bf16.mxu0 %v1253_v0 }
  0x79   :  { %392 = vmatmul.mubr.bf16.gmra.mxu0 %v1134_v33 }
  0x7a   :  { %401 = vmatprep.mubr.bf16.mxu0 %v1253_v0 }
  0x81   :  { %402 = vmatmul.mubr.bf16.gmra.mxu0 %v1135_v34 }
  0x82   :  { %411 = vmatprep.mubr.bf16.mxu0 %v1253_v0 }
  0x89   :  { %412 = vmatmul.mubr.bf16.gmra.mxu0 %v1136_v35 }
  0x8a   :  { %421 = vmatprep.mubr.bf16.mxu0 %v1253_v0 }
  0x91   :  { %422 = vmatmul.mubr.bf16.gmra.mxu0 %v1137_v38 }
  0x92   :  { %431 = vmatprep.mubr.bf16.mxu0 %v1253_v0 }
  0x99   :  { %432 = vmatmul.mubr.bf16.gmra.mxu0 %v1138_v43 }
  0x9a   :  { %441 = vmatprep.mubr.bf16.mxu0 %v1253_v0 }
  0xa1   :  { %442 = vmatmul.mubr.bf16.gmra.mxu0 %v1139_v44 }
  0xa2   :  { %451 = vmatprep.mubr.bf16.mxu0 %v1253_v0 }
  0xa9   :  { %452 = vmatmul.mubr.bf16.gmra.mxu0 %v1140_v45 }
  0xaa   :  { %461 = vmatprep.mubr.bf16.mxu0 %v1253_v0 }
  0xb1   :  { %462 = vmatmul.mubr.bf16.gmra.mxu0 %v1141_v46 }
  0xb2   :  { %471 = vmatprep.mubr.bf16.mxu0 %v1253_v0 }
  0xb9   :  { %472 = vmatmul.mubr.bf16.gmra.mxu0 %v1142_v47 }
  0xba   :  { %481 = vmatprep.mubr.bf16.mxu0 %v1253_v0 }
  0xc1   :  { %482 = vmatmul.mubr.bf16.gmra.mxu0 %v1143_v48 }
 0x109   :  { %v333_v54 = vpop.f32.mrf.mxu0 }
 0x10a   :  { %v334_v61 = vadd.f32 %v333_v54, %v1318_v56 }
 0x10b   :  { %v335_v57 = vpop.f32.mrf.mxu0 }
 0x10c   :  { %v336_v59 = vadd.f32 %v335_v57, %v1316_v55  ;;  %v492_v4 = vmax.f32 %v334_v61, 0.0 }
 0x10d   :  { %v337_v58 = vpop.f32.mrf.mxu0 }
 0x10e   :  { %v338_v60 = vadd.f32 %v337_v58, %v1318_v56  ;;  %v493_v2 = vmax.f32 %v336_v59, 0.0 }
 0x10f   :  { %v339_v62 = vpop.f32.mrf.mxu0 }
 0x110   :  { %v340_v63 = vadd.f32 %v339_v62, %v1316_v55  ;;  %v494_v0 = vmax.f32 %v338_v60, 0.0 }
 0x111   :  { %v343_v1 = vpop.f32.mrf.mxu0 }
 0x112   :  { %v495_v3 = vmax.f32 %v340_v63, 0.0  ;;  %v556_v7 = vpack.c.bf16 %v494_v0, %v492_v4  ;;  %v344_v11 = vadd.f32 %v343_v1, %v1318_v56 }
 0x113   :  { %v345_v5 = vpop.f32.mrf.mxu0 }
 0x114   :  { %v557_v6 = vpack.c.bf16 %v495_v3, %v493_v2  ;;  %v346_v9 = vadd.f32 %v345_v5, %v1316_v55  ;;  %v496_v18 = vmax.f32 %v344_v11, 0.0 }
 0x115   :  { %v347_v8 = vpop.f32.mrf.mxu0 }
 0x116   :  { %v348_v10 = vadd.f32 %v347_v8, %v1318_v56  ;;  %755 = vmatprep.mubr.bf16.mxu1 %v557_v6  ;;  %v497_v16 = vmax.f32 %v346_v9, 0.0 }
 0x117   :  { %v349_v12 = vpop.f32.mrf.mxu0  ;;  %756 = vmatmul.mubr.bf16.vlgmr.msra.gmra.mxu1 %v556_v7 }
 0x118   :  { %v350_v13 = vadd.f32 %v349_v12, %v1316_v55  ;;  %v498_v14 = vmax.f32 %v348_v10, 0.0 }
 0x119   :  { %v353_v15 = vpop.f32.mrf.mxu0 }
 0x11a   :  { %v499_v17 = vmax.f32 %v350_v13, 0.0  ;;  %v558_v21 = vpack.c.bf16 %v498_v14, %v496_v18  ;;  %v354_v25 = vadd.f32 %v353_v15, %v1318_v56 }
 0x11b   :  { %v355_v19 = vpop.f32.mrf.mxu0 }
 0x11c   :  { %v559_v20 = vpack.c.bf16 %v499_v17, %v497_v16  ;;  %v356_v23 = vadd.f32 %v355_v19, %v1316_v55  ;;  %v500_v32 = vmax.f32 %v354_v25, 0.0 }
 0x11d   :  { %v357_v22 = vpop.f32.mrf.mxu0 }
 0x11e   :  { %v358_v24 = vadd.f32 %v357_v22, %v1318_v56  ;;  %763 = vmatprep.mubr.bf16.mxu1 %v559_v20  ;;  %v501_v30 = vmax.f32 %v356_v23, 0.0 }
 0x11f   :  { %v359_v26 = vpop.f32.mrf.mxu0  ;;  %764 = vmatmul.mubr.bf16.gmra.mxu1 %v558_v21 }
 0x120   :  { %v360_v27 = vadd.f32 %v359_v26, %v1316_v55  ;;  %v502_v28 = vmax.f32 %v358_v24, 0.0 }
 0x121   :  { %v363_v29 = vpop.f32.mrf.mxu0 }
 0x122   :  { %v503_v31 = vmax.f32 %v360_v27, 0.0  ;;  %v560_v35 = vpack.c.bf16 %v502_v28, %v500_v32  ;;  %v364_v39 = vadd.f32 %v363_v29, %v1318_v56 }
 0x123   :  { %v365_v33 = vpop.f32.mrf.mxu0 }
 0x124   :  { %v561_v34 = vpack.c.bf16 %v503_v31, %v501_v30  ;;  %v366_v37 = vadd.f32 %v365_v33, %v1316_v55  ;;  %v504_v46 = vmax.f32 %v364_v39, 0.0 }
 0x125   :  { %v367_v36 = vpop.f32.mrf.mxu0 }
 0x126   :  { %v368_v38 = vadd.f32 %v367_v36, %v1318_v56  ;;  %771 = vmatprep.mubr.bf16.mxu1 %v561_v34  ;;  %v505_v44 = vmax.f32 %v366_v37, 0.0 }
 0x127   :  { %v369_v40 = vpop.f32.mrf.mxu0  ;;  %772 = vmatmul.mubr.bf16.gmra.mxu1 %v560_v35 }
 0x128   :  { %v370_v41 = vadd.f32 %v369_v40, %v1316_v55  ;;  %v506_v42 = vmax.f32 %v368_v38, 0.0 }
 0x129   :  { %v373_v43 = vpop.f32.mrf.mxu0 }
 0x12a   :  { %v507_v45 = vmax.f32 %v370_v41, 0.0  ;;  %v562_v49 = vpack.c.bf16 %v506_v42, %v504_v46  ;;  %v374_v53 = vadd.f32 %v373_v43, %v1318_v56 }
 0x12b   :  { %v375_v47 = vpop.f32.mrf.mxu0 }
 0x12c   :  { %v563_v48 = vpack.c.bf16 %v507_v45, %v505_v44  ;;  %v376_v51 = vadd.f32 %v375_v47, %v1316_v55  ;;  %v508_v62 = vmax.f32 %v374_v53, 0.0 }
 0x12d   :  { %v377_v50 = vpop.f32.mrf.mxu0 }
 0x12e   :  { %v378_v52 = vadd.f32 %v377_v50, %v1318_v56  ;;  %779 = vmatprep.mubr.bf16.mxu1 %v563_v48  ;;  %v509_v60 = vmax.f32 %v376_v51, 0.0 }
 0x12f   :  { %v379_v54 = vpop.f32.mrf.mxu0  ;;  %780 = vmatmul.mubr.bf16.gmra.mxu1 %v562_v49 }
 0x130   :  { %v380_v57 = vadd.f32 %v379_v54, %v1316_v55  ;;  %v510_v58 = vmax.f32 %v378_v52, 0.0 }
 0x131   :  { %v383_v59 = vpop.f32.mrf.mxu0 }
 0x132   :  { %v511_v61 = vmax.f32 %v380_v57, 0.0  ;;  %v564_v1 = vpack.c.bf16 %v510_v58, %v508_v62  ;;  %v384_v5 = vadd.f32 %v383_v59, %v1318_v56 }
 0x133   :  { %v385_v63 = vpop.f32.mrf.mxu0 }
 0x134   :  { %v565_v0 = vpack.c.bf16 %v511_v61, %v509_v60  ;;  %v386_v3 = vadd.f32 %v385_v63, %v1316_v55  ;;  %v512_v12 = vmax.f32 %v384_v5, 0.0 }
 0x135   :  { %v387_v2 = vpop.f32.mrf.mxu0 }
 0x136   :  { %v388_v4 = vadd.f32 %v387_v2, %v1318_v56  ;;  %787 = vmatprep.mubr.bf16.mxu1 %v565_v0  ;;  %v513_v10 = vmax.f32 %v386_v3, 0.0 }
 0x137   :  { %v389_v6 = vpop.f32.mrf.mxu0  ;;  %788 = vmatmul.mubr.bf16.gmra.mxu1 %v564_v1 }
 0x138   :  { %v390_v7 = vadd.f32 %v389_v6, %v1316_v55  ;;  %v514_v8 = vmax.f32 %v388_v4, 0.0 }
 0x139   :  { %v393_v9 = vpop.f32.mrf.mxu0 }
 0x13a   :  { %v515_v11 = vmax.f32 %v390_v7, 0.0  ;;  %v566_v15 = vpack.c.bf16 %v514_v8, %v512_v12  ;;  %v394_v19 = vadd.f32 %v393_v9, %v1318_v56 }
 0x13b   :  { %v395_v13 = vpop.f32.mrf.mxu0 }
 0x13c   :  { %v567_v14 = vpack.c.bf16 %v515_v11, %v513_v10  ;;  %v396_v17 = vadd.f32 %v395_v13, %v1316_v55  ;;  %v516_v26 = vmax.f32 %v394_v19, 0.0 }
 0x13d   :  { %v397_v16 = vpop.f32.mrf.mxu0 }
 0x13e   :  { %v398_v18 = vadd.f32 %v397_v16, %v1318_v56  ;;  %795 = vmatprep.mubr.bf16.mxu1 %v567_v14  ;;  %v517_v24 = vmax.f32 %v396_v17, 0.0 }
 0x13f   :  { %v399_v20 = vpop.f32.mrf.mxu0  ;;  %796 = vmatmul.mubr.bf16.gmra.mxu1 %v566_v15 }
 0x140   :  { %v400_v21 = vadd.f32 %v399_v20, %v1316_v55  ;;  %v518_v22 = vmax.f32 %v398_v18, 0.0 }
 0x141   :  { %v403_v23 = vpop.f32.mrf.mxu0 }
 0x142   :  { %v519_v25 = vmax.f32 %v400_v21, 0.0  ;;  %v568_v29 = vpack.c.bf16 %v518_v22, %v516_v26  ;;  %v404_v33 = vadd.f32 %v403_v23, %v1318_v56 }
 0x143   :  { %v405_v27 = vpop.f32.mrf.mxu0 }
 0x144   :  { %v569_v28 = vpack.c.bf16 %v519_v25, %v517_v24  ;;  %v406_v31 = vadd.f32 %v405_v27, %v1316_v55  ;;  %v520_v40 = vmax.f32 %v404_v33, 0.0 }
 0x145   :  { %v407_v30 = vpop.f32.mrf.mxu0 }
 0x146   :  { %v408_v32 = vadd.f32 %v407_v30, %v1318_v56  ;;  %803 = vmatprep.mubr.bf16.mxu1 %v569_v28  ;;  %v521_v38 = vmax.f32 %v406_v31, 0.0 }
 0x147   :  { %v409_v34 = vpop.f32.mrf.mxu0  ;;  %804 = vmatmul.mubr.bf16.gmra.mxu1 %v568_v29 }
 0x148   :  { %v410_v35 = vadd.f32 %v409_v34, %v1316_v55  ;;  %v522_v36 = vmax.f32 %v408_v32, 0.0 }
 0x149   :  { %v413_v37 = vpop.f32.mrf.mxu0 }
 0x14a   :  { %v523_v39 = vmax.f32 %v410_v35, 0.0  ;;  %v570_v43 = vpack.c.bf16 %v522_v36, %v520_v40  ;;  %v414_v47 = vadd.f32 %v413_v37, %v1318_v56 }
 0x14b   :  { %v415_v41 = vpop.f32.mrf.mxu0 }
 0x14c   :  { %v571_v42 = vpack.c.bf16 %v523_v39, %v521_v38  ;;  %v416_v45 = vadd.f32 %v415_v41, %v1316_v55  ;;  %v524_v54 = vmax.f32 %v414_v47, 0.0 }
 0x14d   :  { %v417_v44 = vpop.f32.mrf.mxu0 }
 0x14e   :  { %v418_v46 = vadd.f32 %v417_v44, %v1318_v56  ;;  %811 = vmatprep.mubr.bf16.mxu1 %v571_v42  ;;  %v525_v52 = vmax.f32 %v416_v45, 0.0 }
 0x14f   :  { %v419_v48 = vpop.f32.mrf.mxu0  ;;  %812 = vmatmul.mubr.bf16.gmra.mxu1 %v570_v43 }
 0x150   :  { %v420_v49 = vadd.f32 %v419_v48, %v1316_v55  ;;  %v526_v50 = vmax.f32 %v418_v46, 0.0 }
 0x151   :  { %v423_v51 = vpop.f32.mrf.mxu0 }
 0x152   :  { %v527_v53 = vmax.f32 %v420_v49, 0.0  ;;  %v572_v59 = vpack.c.bf16 %v526_v50, %v524_v54  ;;  %v424_v63 = vadd.f32 %v423_v51, %v1318_v56 }
 0x153   :  { %v425_v57 = vpop.f32.mrf.mxu0 }
 0x154   :  { %v573_v58 = vpack.c.bf16 %v527_v53, %v525_v52  ;;  %v426_v61 = vadd.f32 %v425_v57, %v1316_v55  ;;  %v528_v6 = vmax.f32 %v424_v63, 0.0 }
 0x155   :  { %v427_v60 = vpop.f32.mrf.mxu0 }
 0x156   :  { %v428_v62 = vadd.f32 %v427_v60, %v1318_v56  ;;  %819 = vmatprep.mubr.bf16.mxu1 %v573_v58  ;;  %v529_v4 = vmax.f32 %v426_v61, 0.0 }
 0x157   :  { %v429_v0 = vpop.f32.mrf.mxu0  ;;  %820 = vmatmul.mubr.bf16.gmra.mxu1 %v572_v59 }
 0x158   :  { %v430_v1 = vadd.f32 %v429_v0, %v1316_v55  ;;  %v530_v2 = vmax.f32 %v428_v62, 0.0 }
 0x159   :  { %v433_v3 = vpop.f32.mrf.mxu0 }
 0x15a   :  { %v531_v5 = vmax.f32 %v430_v1, 0.0  ;;  %v574_v9 = vpack.c.bf16 %v530_v2, %v528_v6  ;;  %v434_v13 = vadd.f32 %v433_v3, %v1318_v56 }
 0x15b   :  { %v435_v7 = vpop.f32.mrf.mxu0 }
 0x15c   :  { %v575_v8 = vpack.c.bf16 %v531_v5, %v529_v4  ;;  %v436_v11 = vadd.f32 %v435_v7, %v1316_v55  ;;  %v532_v20 = vmax.f32 %v434_v13, 0.0 }
 0x15d   :  { %v437_v10 = vpop.f32.mrf.mxu0 }
 0x15e   :  { %v438_v12 = vadd.f32 %v437_v10, %v1318_v56  ;;  %827 = vmatprep.mubr.bf16.mxu1 %v575_v8  ;;  %v533_v18 = vmax.f32 %v436_v11, 0.0 }
 0x15f   :  { %v439_v14 = vpop.f32.mrf.mxu0  ;;  %828 = vmatmul.mubr.bf16.gmra.mxu1 %v574_v9 }
 0x160   :  { %v440_v15 = vadd.f32 %v439_v14, %v1316_v55  ;;  %v534_v16 = vmax.f32 %v438_v12, 0.0 }
 0x161   :  { %v443_v17 = vpop.f32.mrf.mxu0 }
 0x162   :  { %v535_v19 = vmax.f32 %v440_v15, 0.0  ;;  %v576_v23 = vpack.c.bf16 %v534_v16, %v532_v20  ;;  %v444_v27 = vadd.f32 %v443_v17, %v1318_v56 }
 0x163   :  { %v445_v21 = vpop.f32.mrf.mxu0 }
 0x164   :  { %v577_v22 = vpack.c.bf16 %v535_v19, %v533_v18  ;;  %v446_v25 = vadd.f32 %v445_v21, %v1316_v55  ;;  %v536_v34 = vmax.f32 %v444_v27, 0.0 }
 0x165   :  { %v447_v24 = vpop.f32.mrf.mxu0 }
 0x166   :  { %v448_v26 = vadd.f32 %v447_v24, %v1318_v56  ;;  %835 = vmatprep.mubr.bf16.mxu1 %v577_v22  ;;  %v537_v32 = vmax.f32 %v446_v25, 0.0 }
 0x167   :  { %v449_v28 = vpop.f32.mrf.mxu0  ;;  %836 = vmatmul.mubr.bf16.gmra.mxu1 %v576_v23 }
 0x168   :  { %v450_v29 = vadd.f32 %v449_v28, %v1316_v55  ;;  %v538_v30 = vmax.f32 %v448_v26, 0.0 }
 0x169   :  { %v453_v31 = vpop.f32.mrf.mxu0 }
 0x16a   :  { %v539_v33 = vmax.f32 %v450_v29, 0.0  ;;  %v578_v37 = vpack.c.bf16 %v538_v30, %v536_v34  ;;  %v454_v41 = vadd.f32 %v453_v31, %v1318_v56  ;;  %v1387_v31 = vld [vmem:[%s1431_s4] ss:$0 sm:$0xff]  ;;  %s1254_s4 = smov [#allocation8]  }
 0x16b   :  { %v455_v35 = vpop.f32.mrf.mxu0  ;;  %s921_s12 = sshll.u32 %s1254_s4, 4  ;;  %s922_s12 = int_to_ptr.vmem [resolvable:$true] %s921_s12 }
 0x16c   :  { %v579_v36 = vpack.c.bf16 %v539_v33, %v537_v32  ;;  %v456_v39 = vadd.f32 %v455_v35, %v1316_v55  ;;  %v540_v48 = vmax.f32 %v454_v41, 0.0  ;;  %s1220_s13 = scalar_lea.vmem %s922_s12, 4096  ;;  %p1225_p2 = scmp.lt.s32.totalorder %s922_s12, %s922_s12 }
 0x16d   :  { %v457_v38 = vpop.f32.mrf.mxu0  ;;  %p1221_p1 = scmp.ne.s32.totalorder %s922_s12, %s1220_s13  ;;  %p1226_p3 = scmp.lt.s32.totalorder %s1220_s13, %s1220_s13 }
 0x16e   :  { %v458_v40 = vadd.f32 %v457_v38, %v1318_v56  ;;  %843 = vmatprep.mubr.bf16.mxu1 %v579_v36  ;;  %v541_v46 = vmax.f32 %v456_v39, 0.0 }
 0x16f   :  { %v459_v42 = vpop.f32.mrf.mxu0  ;;  %844 = vmatmul.mubr.bf16.gmra.mxu1 %v578_v37  ;;  %p1227_p4 = por %p1226_p3, %p1225_p2 }
 0x170   :  { %v460_v43 = vadd.f32 %v459_v42, %v1316_v55  ;;  %v542_v44 = vmax.f32 %v458_v40, 0.0 }
 0x171   :  { %v463_v45 = vpop.f32.mrf.mxu0  ;;  %p1228_p5 = pnand %p1227_p4, %p1221_p1 }
 0x172   :  { %v543_v47 = vmax.f32 %v460_v43, 0.0  ;;  %v580_v51 = vpack.c.bf16 %v542_v44, %v540_v48  ;;  %v464_v57 = vadd.f32 %v463_v45, %v1318_v56 }
 0x173   :  { %v465_v49 = vpop.f32.mrf.mxu0 }
 0x174   :  { %v581_v50 = vpack.c.bf16 %v543_v47, %v541_v46  ;;  %v466_v53 = vadd.f32 %v465_v49, %v1316_v55  ;;  %v544_v0 = vmax.f32 %v464_v57, 0.0 }
 0x175   :  { %v467_v52 = vpop.f32.mrf.mxu0 }
 0x176   :  { %v468_v54 = vadd.f32 %v467_v52, %v1318_v56  ;;  %851 = vmatprep.mubr.bf16.mxu1 %v581_v50  ;;  %v545_v62 = vmax.f32 %v466_v53, 0.0 }
 0x177   :  { %v469_v58 = vpop.f32.mrf.mxu0  ;;  %852 = vmatmul.mubr.bf16.gmra.mxu1 %v580_v51 }
 0x178   :  { %v470_v59 = vadd.f32 %v469_v58, %v1316_v55  ;;  %v546_v60 = vmax.f32 %v468_v54, 0.0 }
 0x179   :  { %v473_v61 = vpop.f32.mrf.mxu0 }
 0x17a   :  { %v547_v63 = vmax.f32 %v470_v59, 0.0  ;;  %v582_v3 = vpack.c.bf16 %v546_v60, %v544_v0  ;;  %v474_v7 = vadd.f32 %v473_v61, %v1318_v56 }
 0x17b   :  { %v475_v1 = vpop.f32.mrf.mxu0 }
 0x17c   :  { %v583_v2 = vpack.c.bf16 %v547_v63, %v545_v62  ;;  %v476_v5 = vadd.f32 %v475_v1, %v1316_v55  ;;  %v548_v14 = vmax.f32 %v474_v7, 0.0 }
 0x17d   :  { %v477_v4 = vpop.f32.mrf.mxu0 }
 0x17e   :  { %v478_v6 = vadd.f32 %v477_v4, %v1318_v56  ;;  %859 = vmatprep.mubr.bf16.mxu1 %v583_v2  ;;  %v549_v12 = vmax.f32 %v476_v5, 0.0 }
 0x17f   :  { %v479_v8 = vpop.f32.mrf.mxu0  ;;  %860 = vmatmul.mubr.bf16.gmra.mxu1 %v582_v3 }
 0x180   :  { %v480_v9 = vadd.f32 %v479_v8, %v1316_v55  ;;  %v550_v10 = vmax.f32 %v478_v6, 0.0 }
 0x181   :  { %v483_v11 = vpop.f32.mrf.mxu0 }
 0x182   :  { %v551_v13 = vmax.f32 %v480_v9, 0.0  ;;  %v584_v17 = vpack.c.bf16 %v550_v10, %v548_v14  ;;  %v484_v21 = vadd.f32 %v483_v11, %v1318_v56 }
 0x183   :  { %v485_v15 = vpop.f32.mrf.mxu0 }
 0x184   :  { %v585_v16 = vpack.c.bf16 %v551_v13, %v549_v12  ;;  %v486_v19 = vadd.f32 %v485_v15, %v1316_v55  ;;  %v552_v27 = vmax.f32 %v484_v21, 0.0 }
 0x185   :  { %v487_v18 = vpop.f32.mrf.mxu0 }
 0x186   :  { %v488_v20 = vadd.f32 %v487_v18, %v1318_v56  ;;  %867 = vmatprep.mubr.bf16.mxu1 %v585_v16  ;;  %v553_v25 = vmax.f32 %v486_v19, 0.0 }
 0x187   :  { %v489_v22 = vpop.f32.mrf.mxu0  ;;  %868 = vmatmul.mubr.bf16.gmra.mxu1 %v584_v17 }
 0x188   :  { %v490_v23 = vadd.f32 %v489_v22, %v1316_v55  ;;  %v554_v24 = vmax.f32 %v488_v20, 0.0 }
 0x18a   :  { %v555_v26 = vmax.f32 %v490_v23, 0.0  ;;  %v586_v29 = vpack.c.bf16 %v554_v24, %v552_v27 }
 0x18c   :  { %v587_v28 = vpack.c.bf16 %v555_v26, %v553_v25 }
 0x18e   :  { %875 = vmatprep.mubr.bf16.mxu1 %v587_v28 }
 0x18f   :  { %876 = vmatmul.mubr.bf16.gmra.mxu1 %v586_v29 }
 0x1d7   :  { %v999_v30 = vpop.f32.mrf.mxu1 }
 0x1d9   :  { %v1000_v32 = vpop.f32.mrf.mxu1 }
 0x1da   :  { %v1001_v56 = vadd.f32 %v1000_v32, %v999_v30 }
 0x1db   :  { %v1002_v33 = vpop.f32.mrf.mxu1 }
 0x1dc   :  { %v758_v34 = vadd.f32 %v1001_v56, %v1387_v31 }
 0x1dd   :  { %v1003_v55 = vpop.f32.mrf.mxu1 }
 0x1de   :  { %884 = vst [vmem:[#allocation8] sm:$0xff] %v758_v34  ;;  %v1004_v35 = vadd.f32 %v1003_v55, %v1002_v33 }
 0x1df   :  { %v1005_v36 = vpop.f32.mrf.mxu1 }
 0x1e0   :  { %v761_v37 = vadd.f32 %v1004_v35, %v1387_v31 }
 0x1e1   :  { %v1006_v38 = vpop.f32.mrf.mxu1 }
 0x1e2   :  { %885 = vst [vmem:[#allocation8 + $0x8] sm:$0xff] %v761_v37  ;;  %v1007_v39 = vadd.f32 %v1006_v38, %v1005_v36 }
 0x1e3   :  { %v1008_v40 = vpop.f32.mrf.mxu1 }
 0x1e4   :  { %v766_v41 = vadd.f32 %v1007_v39, %v1387_v31 }
 0x1e5   :  { %v1009_v42 = vpop.f32.mrf.mxu1 }
 0x1e6   :  { %886 = vst [vmem:[#allocation8 + $0x10] sm:$0xff] %v766_v41  ;;  %v1010_v43 = vadd.f32 %v1009_v42, %v1008_v40 }
 0x1e7   :  { %v1011_v44 = vpop.f32.mrf.mxu1 }
 0x1e8   :  { %v769_v45 = vadd.f32 %v1010_v43, %v1387_v31 }
 0x1e9   :  { %v1012_v46 = vpop.f32.mrf.mxu1 }
 0x1ea   :  { %887 = vst [vmem:[#allocation8 + $0x18] sm:$0xff] %v769_v45  ;;  %v1013_v47 = vadd.f32 %v1012_v46, %v1011_v44 }
 0x1eb   :  { %v1014_v48 = vpop.f32.mrf.mxu1 }
 0x1ec   :  { %v774_v49 = vadd.f32 %v1013_v47, %v1387_v31 }
 0x1ed   :  { %v1015_v50 = vpop.f32.mrf.mxu1 }
 0x1ee   :  { %888 = vst [vmem:[#allocation8 + $0x20] sm:$0xff] %v774_v49  ;;  %v1016_v51 = vadd.f32 %v1015_v50, %v1014_v48 }
 0x1ef   :  { %v1017_v52 = vpop.f32.mrf.mxu1 }
 0x1f0   :  { %v777_v53 = vadd.f32 %v1016_v51, %v1387_v31 }
 0x1f1   :  { %v1018_v54 = vpop.f32.mrf.mxu1 }
 0x1f2   :  { %889 = vst [vmem:[#allocation8 + $0x28] sm:$0xff] %v777_v53  ;;  %v1019_v57 = vadd.f32 %v1018_v54, %v1017_v52 }
 0x1f3   :  { %v1020_v58 = vpop.f32.mrf.mxu1 }
 0x1f4   :  { %v782_v59 = vadd.f32 %v1019_v57, %v1387_v31 }
 0x1f5   :  { %v1021_v60 = vpop.f32.mrf.mxu1 }
 0x1f6   :  { %890 = vst [vmem:[#allocation8 + $0x30] sm:$0xff] %v782_v59  ;;  %v1022_v61 = vadd.f32 %v1021_v60, %v1020_v58 }
 0x1f7   :  { %v1023_v62 = vpop.f32.mrf.mxu1 }
 0x1f8   :  { %v785_v63 = vadd.f32 %v1022_v61, %v1387_v31 }
 0x1f9   :  { %v1024_v0 = vpop.f32.mrf.mxu1 }
 0x1fa   :  { %891 = vst [vmem:[#allocation8 + $0x38] sm:$0xff] %v785_v63  ;;  %v1025_v1 = vadd.f32 %v1024_v0, %v1023_v62 }
 0x1fb   :  { %v1026_v2 = vpop.f32.mrf.mxu1 }
 0x1fc   :  { %v790_v3 = vadd.f32 %v1025_v1, %v1387_v31 }
 0x1fd   :  { %v1027_v4 = vpop.f32.mrf.mxu1 }
 0x1fe   :  { %892 = vst [vmem:[#allocation8 + $0x40] sm:$0xff] %v790_v3  ;;  %v1028_v5 = vadd.f32 %v1027_v4, %v1026_v2 }
 0x1ff   :  { %v1029_v6 = vpop.f32.mrf.mxu1 }
 0x200   :  { %v793_v7 = vadd.f32 %v1028_v5, %v1387_v31 }
 0x201   :  { %v1030_v8 = vpop.f32.mrf.mxu1 }
 0x202   :  { %893 = vst [vmem:[#allocation8 + $0x48] sm:$0xff] %v793_v7  ;;  %v1031_v9 = vadd.f32 %v1030_v8, %v1029_v6 }
 0x203   :  { %v1032_v10 = vpop.f32.mrf.mxu1 }
 0x204   :  { %v798_v11 = vadd.f32 %v1031_v9, %v1387_v31 }
 0x205   :  { %v1033_v12 = vpop.f32.mrf.mxu1 }
 0x206   :  { %894 = vst [vmem:[#allocation8 + $0x50] sm:$0xff] %v798_v11  ;;  %v1034_v13 = vadd.f32 %v1033_v12, %v1032_v10 }
 0x207   :  { %v1035_v14 = vpop.f32.mrf.mxu1 }
 0x208   :  { %v801_v15 = vadd.f32 %v1034_v13, %v1387_v31 }
 0x209   :  { %v1036_v16 = vpop.f32.mrf.mxu1 }
 0x20a   :  { %895 = vst [vmem:[#allocation8 + $0x58] sm:$0xff] %v801_v15  ;;  %v1037_v17 = vadd.f32 %v1036_v16, %v1035_v14 }
 0x20b   :  { %v1038_v18 = vpop.f32.mrf.mxu1 }
 0x20c   :  { %v806_v19 = vadd.f32 %v1037_v17, %v1387_v31 }
 0x20d   :  { %v1039_v20 = vpop.f32.mrf.mxu1 }
 0x20e   :  { %896 = vst [vmem:[#allocation8 + $0x60] sm:$0xff] %v806_v19  ;;  %v1040_v21 = vadd.f32 %v1039_v20, %v1038_v18 }
 0x20f   :  { %v1041_v22 = vpop.f32.mrf.mxu1 }
 0x210   :  { %v809_v23 = vadd.f32 %v1040_v21, %v1387_v31 }
 0x211   :  { %v1042_v24 = vpop.f32.mrf.mxu1 }
 0x212   :  { %897 = vst [vmem:[#allocation8 + $0x68] sm:$0xff] %v809_v23  ;;  %v1043_v25 = vadd.f32 %v1042_v24, %v1041_v22 }
 0x213   :  { %v1044_v26 = vpop.f32.mrf.mxu1 }
 0x214   :  { %v814_v27 = vadd.f32 %v1043_v25, %v1387_v31 }
 0x215   :  { %v1045_v28 = vpop.f32.mrf.mxu1 }
 0x216   :  { %898 = vst [vmem:[#allocation8 + $0x70] sm:$0xff] %v814_v27  ;;  %v1046_v29 = vadd.f32 %v1045_v28, %v1044_v26 }
 0x217   :  { %v1047_v30 = vpop.f32.mrf.mxu1 }
 0x218   :  { %v817_v32 = vadd.f32 %v1046_v29, %v1387_v31 }
 0x219   :  { %v1048_v56 = vpop.f32.mrf.mxu1 }
 0x21a   :  { %899 = vst [vmem:[#allocation8 + $0x78] sm:$0xff] %v817_v32  ;;  %v1049_v33 = vadd.f32 %v1048_v56, %v1047_v30 }
 0x21b   :  { %v1050_v34 = vpop.f32.mrf.mxu1 }
 0x21c   :  { %v822_v55 = vadd.f32 %v1049_v33, %v1387_v31 }
 0x21d   :  { %v1051_v35 = vpop.f32.mrf.mxu1 }
 0x21e   :  { %900 = vst [vmem:[#allocation8 + $0x80] sm:$0xff] %v822_v55  ;;  %v1052_v36 = vadd.f32 %v1051_v35, %v1050_v34 }
 0x21f   :  { %v1053_v37 = vpop.f32.mrf.mxu1 }
 0x220   :  { %v825_v38 = vadd.f32 %v1052_v36, %v1387_v31 }
 0x221   :  { %v1054_v39 = vpop.f32.mrf.mxu1 }
 0x222   :  { %901 = vst [vmem:[#allocation8 + $0x88] sm:$0xff] %v825_v38  ;;  %v1055_v40 = vadd.f32 %v1054_v39, %v1053_v37 }
 0x223   :  { %v1056_v41 = vpop.f32.mrf.mxu1 }
 0x224   :  { %v830_v42 = vadd.f32 %v1055_v40, %v1387_v31 }
 0x225   :  { %v1057_v43 = vpop.f32.mrf.mxu1 }
 0x226   :  { %902 = vst [vmem:[#allocation8 + $0x90] sm:$0xff] %v830_v42  ;;  %v1058_v44 = vadd.f32 %v1057_v43, %v1056_v41 }
 0x227   :  { %v1059_v45 = vpop.f32.mrf.mxu1 }
 0x228   :  { %v833_v46 = vadd.f32 %v1058_v44, %v1387_v31 }
 0x229   :  { %v1060_v47 = vpop.f32.mrf.mxu1 }
 0x22a   :  { %903 = vst [vmem:[#allocation8 + $0x98] sm:$0xff] %v833_v46  ;;  %v1061_v48 = vadd.f32 %v1060_v47, %v1059_v45 }
 0x22b   :  { %v1062_v49 = vpop.f32.mrf.mxu1 }
 0x22c   :  { %v838_v50 = vadd.f32 %v1061_v48, %v1387_v31 }
 0x22d   :  { %v1063_v51 = vpop.f32.mrf.mxu1 }
 0x22e   :  { %904 = vst [vmem:[#allocation8 + $0xa0] sm:$0xff] %v838_v50  ;;  %v1064_v52 = vadd.f32 %v1063_v51, %v1062_v49 }
 0x22f   :  { %v1065_v53 = vpop.f32.mrf.mxu1 }
 0x230   :  { %v841_v54 = vadd.f32 %v1064_v52, %v1387_v31 }
 0x231   :  { %v1066_v57 = vpop.f32.mrf.mxu1 }
 0x232   :  { %905 = vst [vmem:[#allocation8 + $0xa8] sm:$0xff] %v841_v54  ;;  %v1067_v58 = vadd.f32 %v1066_v57, %v1065_v53 }
 0x233   :  { %v1068_v59 = vpop.f32.mrf.mxu1 }
 0x234   :  { %v846_v60 = vadd.f32 %v1067_v58, %v1387_v31 }
 0x235   :  { %v1069_v61 = vpop.f32.mrf.mxu1 }
 0x236   :  { %906 = vst [vmem:[#allocation8 + $0xb0] sm:$0xff] %v846_v60  ;;  %v1070_v62 = vadd.f32 %v1069_v61, %v1068_v59 }
 0x237   :  { %v1071_v63 = vpop.f32.mrf.mxu1 }
 0x238   :  { %v849_v0 = vadd.f32 %v1070_v62, %v1387_v31 }
 0x239   :  { %v1072_v1 = vpop.f32.mrf.mxu1 }
 0x23a   :  { %907 = vst [vmem:[#allocation8 + $0xb8] sm:$0xff] %v849_v0  ;;  %v1073_v2 = vadd.f32 %v1072_v1, %v1071_v63 }
 0x23b   :  { %v1074_v3 = vpop.f32.mrf.mxu1 }
 0x23c   :  { %v854_v4 = vadd.f32 %v1073_v2, %v1387_v31 }
 0x23d   :  { %v1075_v5 = vpop.f32.mrf.mxu1 }
 0x23e   :  { %908 = vst [vmem:[#allocation8 + $0xc0] sm:$0xff] %v854_v4  ;;  %v1076_v6 = vadd.f32 %v1075_v5, %v1074_v3 }
 0x23f   :  { %v1077_v7 = vpop.f32.mrf.mxu1 }
 0x240   :  { %v857_v8 = vadd.f32 %v1076_v6, %v1387_v31 }
 0x241   :  { %v1078_v9 = vpop.f32.mrf.mxu1 }
 0x242   :  { %909 = vst [vmem:[#allocation8 + $0xc8] sm:$0xff] %v857_v8  ;;  %v1079_v10 = vadd.f32 %v1078_v9, %v1077_v7 }
 0x243   :  { %v1080_v11 = vpop.f32.mrf.mxu1 }
 0x244   :  { %v862_v12 = vadd.f32 %v1079_v10, %v1387_v31 }
 0x245   :  { %v1081_v13 = vpop.f32.mrf.mxu1 }
 0x246   :  { %910 = vst [vmem:[#allocation8 + $0xd0] sm:$0xff] %v862_v12  ;;  %v1082_v14 = vadd.f32 %v1081_v13, %v1080_v11 }
 0x247   :  { %v1083_v15 = vpop.f32.mrf.mxu1 }
 0x248   :  { %v865_v16 = vadd.f32 %v1082_v14, %v1387_v31 }
 0x249   :  { %v1084_v17 = vpop.f32.mrf.mxu1 }
 0x24a   :  { %911 = vst [vmem:[#allocation8 + $0xd8] sm:$0xff] %v865_v16  ;;  %v1085_v18 = vadd.f32 %v1084_v17, %v1083_v15 }
 0x24b   :  { %v1086_v19 = vpop.f32.mrf.mxu1 }
 0x24c   :  { %v870_v20 = vadd.f32 %v1085_v18, %v1387_v31 }
 0x24d   :  { %v1087_v21 = vpop.f32.mrf.mxu1 }
 0x24e   :  { %912 = vst [vmem:[#allocation8 + $0xe0] sm:$0xff] %v870_v20  ;;  %v1088_v22 = vadd.f32 %v1087_v21, %v1086_v19 }
 0x24f   :  { %v1089_v23 = vpop.f32.mrf.mxu1 }
 0x250   :  { %v873_v24 = vadd.f32 %v1088_v22, %v1387_v31 }
 0x251   :  { %v1090_v25 = vpop.f32.mrf.mxu1 }
 0x252   :  { %913 = vst [vmem:[#allocation8 + $0xe8] sm:$0xff] %v873_v24  ;;  %v1091_v26 = vadd.f32 %v1090_v25, %v1089_v23 }
 0x253   :  { %v1092_v27 = vpop.f32.mrf.mxu1 }
 0x254   :  { %v878_v28 = vadd.f32 %v1091_v26, %v1387_v31 }
 0x255   :  { %v1093_v29 = vpop.f32.mrf.mxu1 }
 0x256   :  { %914 = vst [vmem:[#allocation8 + $0xf0] sm:$0xff] %v878_v28  ;;  %v1094_v30 = vadd.f32 %v1093_v29, %v1092_v27 }
 0x258   :  { %v881_v32 = vadd.f32 %v1094_v30, %v1387_v31 }
 0x25a   :  { %915 = vst [vmem:[#allocation8 + $0xf8] sm:$0xff] %v881_v32 }
 0x25b   :  { %1231 = shalt.err (!%p1228_p5)
}
 0x25c   :  { %927 = dma.vmem_to_hbm [thread:$0]  %s922_s12, 4096, %s1432_s5, [#allocation4], %s1247_s21, %s1247_s21, %s1248_s22  }
 0x25d   :  { %1244 = dma.done.wait [#allocation4], 4096  }
 0x25e   :  { %1245 = vsyncadd [#allocation4], 4294963200 }
 0x25f   :  { %931 = vsyncpa [#allocation3], 1 }
 0x260   :  { %932 = vsyncpa [#allocation6], 1 }
 0x261   :  { %933 = vsyncpa [#allocation4], 1 }

</bundles_post_ra>
